<compile_context>
chip_gen: v7x
topology: tpu7x:2x2x1
jax: 0.10.0
libtpu: 0.0.40
codegen_flags: <defaults>
</compile_context>

<pallas_src>
import jax
import jax.numpy as jnp
from jax.experimental import pallas as pl
from jax.experimental.pallas import tpu as pltpu


# ----------------------------------------------------------------------------
# Tile-size helpers
# ----------------------------------------------------------------------------
def _pick_hw_tile(total_hw, c_in, c_out, budget_bytes=6 << 20, align=128):
    """Lane tile for the projection kernel: multiple of 128 that divides H*W."""
    if total_hw % align != 0:
        # Fall back to the full spatial extent (full-dim block is always legal).
        return total_hw
    bytes_per_lane = 4 * (c_in + 3 * c_out) * 2   # in + 3 outs, double-buffered, f32
    t = min(total_hw, 2048, max(align, budget_bytes // max(bytes_per_lane, 1)))
    t = max(align, (t // align) * align)
    while total_hw % t != 0:                      # keep it an exact divisor
        t -= align
    return t


def _pick_channel_tile(c, h, w, budget_bytes=4 << 20):
    """Channel tile for the attention kernel (channels are a batch axis)."""
    per_chan = (3 * h * w + h * w + h * h) * 4    # q,k,v,out + att logits, f32
    tc = max(1, min(c, budget_bytes // max(per_chan, 1)))
    while c % tc != 0:                            # exact divisor of C
        tc -= 1
    return tc


# ----------------------------------------------------------------------------
# Kernel 1: fused 1x1-conv QKV projection (channel matmul over a spatial tile)
# ----------------------------------------------------------------------------
def _qkv_proj_kernel(x_ref, w_ref, b_ref, q_ref, k_ref, v_ref):
    # x_ref: (1, C_in, T)   w_ref: (3, C_out, C_in)   b_ref: (3, C_out, 1)
    x = x_ref[0].astype(jnp.float32)                       # (C_in, T)
    outs = (q_ref, k_ref, v_ref)
    for i in range(3):                                     # static unrolled
        w = w_ref[i].astype(jnp.float32)                   # (C_out, C_in)
        b = b_ref[i].astype(jnp.float32)                   # (C_out, 1)
        y = jnp.dot(w, x, preferred_element_type=jnp.float32) + b
        outs[i][0] = y.astype(outs[i].dtype)


def qkv_projection(x, wq, wk, wv, bq, bk, bv):
    B, C_in, H, W = x.shape
    C_out = wq.shape[0]
    HW = H * W
    t = _pick_hw_tile(HW, C_in, C_out)

    x2 = x.reshape(B, C_in, HW)
    w = jnp.stack([wq, wk, wv], axis=0)                    # (3, C_out, C_in)
    b = jnp.stack([bq, bk, bv], axis=0).reshape(3, C_out, 1)

    out_sd = jax.ShapeDtypeStruct((B, C_out, HW), x.dtype)
    io_spec = pl.BlockSpec((1, C_out, t), lambda bb, s: (bb, 0, s))

    q2, k2, v2 = pl.pallas_call(
        _qkv_proj_kernel,
        out_shape=(out_sd, out_sd, out_sd),
        grid_spec=pltpu.PrefetchScalarGridSpec(
            num_scalar_prefetch=0,
            grid=(B, HW // t),
            in_specs=[
                pl.BlockSpec((1, C_in, t), lambda bb, s: (bb, 0, s)),
                pl.BlockSpec((3, C_out, C_in), lambda bb, s: (0, 0, 0)),
                pl.BlockSpec((3, C_out, 1), lambda bb, s: (0, 0, 0)),
            ],
            out_specs=[io_spec, io_spec, io_spec],
        ),
        compiler_params=pltpu.CompilerParams(
            dimension_semantics=("parallel", "parallel")),
    )(x2, w, b)

    return (q2.reshape(B, C_out, H, W),
            k2.reshape(B, C_out, H, W),
            v2.reshape(B, C_out, H, W))


# ----------------------------------------------------------------------------
# Kernel 2: row attention with identity-skip regularizer
# ----------------------------------------------------------------------------
def _row_attention_kernel(q_ref, k_ref, v_ref, eye_ref, o_ref):
    # q/k/v/o blocks: (1, TC, H, W)    eye_ref: (H, H) == sigmoid(gamma) * I
    q = q_ref[0].astype(jnp.float32)                       # (TC, H, W)
    k = k_ref[0].astype(jnp.float32)
    v = v_ref[0].astype(jnp.float32)
    reg = eye_ref[...].astype(jnp.float32)                 # (H, H)

    # att[c, i, j] = sum_w q[c, i, w] * k[c, j, w]
    att = jnp.einsum('ciw,cjw->cij', q, k, preferred_element_type=jnp.float32)
    att = att + reg[None, :, :]                            # skip term (sigmoid>0 always)

    # softmax over the *query* axis i (torch dim=2 of the 4-D tensor)
    m = jnp.max(att, axis=1, keepdims=True)
    p = jnp.exp(att - m)
    denom = jnp.sum(p, axis=1, keepdims=True)
    p = p / denom

    # out[c, i, w] = sum_j p[c, i, j] * v[c, j, w]
    out = jnp.einsum('cij,cjw->ciw', p, v, preferred_element_type=jnp.float32)
    o_ref[0] = out.astype(o_ref.dtype)


def row_attention(q, k, v, gamma_sig):
    B, C, H, W = q.shape
    tc = _pick_channel_tile(C, H, W)
    reg_eye = (gamma_sig * jnp.eye(H, dtype=jnp.float32))  # (H, H)

    qkv_spec = pl.BlockSpec((1, tc, H, W), lambda bb, cc: (bb, cc, 0, 0))

    return pl.pallas_call(
        _row_attention_kernel,
        out_shape=jax.ShapeDtypeStruct((B, C, H, W), q.dtype),
        grid_spec=pltpu.PrefetchScalarGridSpec(
            num_scalar_prefetch=0,
            grid=(B, C // tc),
            in_specs=[
                qkv_spec, qkv_spec, qkv_spec,
                pl.BlockSpec((H, H), lambda bb, cc: (0, 0)),
            ],
            out_specs=qkv_spec,
        ),
        compiler_params=pltpu.CompilerParams(
            dimension_semantics=("parallel", "parallel")),
    )(q, k, v, reg_eye)


# ----------------------------------------------------------------------------
# Full module forward
# ----------------------------------------------------------------------------
def fskip_attention_row(x, wq, bq, wk, bk, wv, bv, gamma):
    q, k, v = qkv_projection(x, wq, wk, wv, bq, bk, bv)
    g = jax.nn.sigmoid(gamma.astype(jnp.float32))[0]       # gamma init = 2.0 in torch
    return row_attention(q, k, v, g)


if __name__ == "__main__":
    key = jax.random.PRNGKey(0)
    kx, kq, kk, kv, kbq, kbk, kbv = jax.random.split(key, 7)

    B, C, H, W = 2, 4, 16, 16
    x = jax.random.normal(kx, (B, C, H, W), dtype=jnp.float32)
    scale = 1.0 / jnp.sqrt(C)
    wq = jax.random.normal(kq, (C, C), dtype=jnp.float32) * scale
    wk = jax.random.normal(kk, (C, C), dtype=jnp.float32) * scale
    wv = jax.random.normal(kv, (C, C), dtype=jnp.float32) * scale
    bq = jax.random.normal(kbq, (C,), dtype=jnp.float32) * 0.1
    bk = jax.random.normal(kbk, (C,), dtype=jnp.float32) * 0.1
    bv = jax.random.normal(kbv, (C,), dtype=jnp.float32) * 0.1
    gamma = jnp.array([2.0], dtype=jnp.float32)            # torch: ftns([2])

    y = fskip_attention_row(x, wq, bq, wk, bk, wv, bv, gamma)
    y = jax.block_until_ready(y)

    # Plain-JAX reference with the exact PyTorch-forward semantics.
    Qr = jnp.einsum('oc,bchw->bohw', wq, x) + bq[None, :, None, None]
    Kr = jnp.einsum('oc,bchw->bohw', wk, x) + bk[None, :, None, None]
    Vr = jnp.einsum('oc,bchw->bohw', wv, x) + bv[None, :, None, None]
    g = jax.nn.sigmoid(gamma)[0]
    att = jnp.einsum('bciw,bcjw->bcij', Qr, Kr) + g * jnp.eye(H, dtype=jnp.float32)
    att = jax.nn.softmax(att, axis=2)                      # softmax over query axis (dim=2)
    ref = jnp.einsum('bcij,bcjw->bciw', att, Vr)

    assert y.shape == x.shape and y.dtype == x.dtype
    assert jnp.allclose(y, ref, atol=2e-3, rtol=2e-3)

    print("KERNEL_OK")
</pallas_src>

<mosaic_0001>
module attributes {stable_mosaic.version = 11 : i64} {
  func.func @_qkv_proj_kernel(%arg0: i32, %arg1: i32, %arg2: memref<1x4x256xf32, #tpu.memory_space<vmem>>, %arg3: memref<3x4x4xf32, #tpu.memory_space<vmem>>, %arg4: memref<3x4x1xf32, #tpu.memory_space<vmem>>, %arg5: memref<1x4x256xf32, #tpu.memory_space<vmem>>, %arg6: memref<1x4x256xf32, #tpu.memory_space<vmem>>, %arg7: memref<1x4x256xf32, #tpu.memory_space<vmem>>) attributes {dimension_semantics = [#tpu.dimension_semantics<parallel>, #tpu.dimension_semantics<parallel>], iteration_bounds = array<i64: 2, 1>, scalar_prefetch = 0 : i64, scratch_operands = 0 : i64, tpu.core_type = #tpu.core_type<tc>, window_params = [{transform_indices = @transform_0, window_bounds = array<i64: 1, 4, 256>}, {pipeline_mode = #tpu.pipeline_mode<synchronous>, transform_indices = @transform_1, window_bounds = array<i64: 3, 4, 4>}, {pipeline_mode = #tpu.pipeline_mode<synchronous>, transform_indices = @transform_2, window_bounds = array<i64: 3, 4, 1>}, {transform_indices = @transform_3, window_bounds = array<i64: 1, 4, 256>}, {transform_indices = @transform_4, window_bounds = array<i64: 1, 4, 256>}, {transform_indices = @transform_5, window_bounds = array<i64: 1, 4, 256>}]} {
    %c0 = arith.constant 0 : index
    %c0_0 = arith.constant 0 : index
    %c0_1 = arith.constant 0 : index
    %0 = vector.load %arg2[%c0, %c0_0, %c0_1] : memref<1x4x256xf32, #tpu.memory_space<vmem>>, vector<1x4x256xf32>
    %1 = vector.shape_cast %0 : vector<1x4x256xf32> to vector<4x256xf32>
    %c0_2 = arith.constant 0 : index
    %c0_3 = arith.constant 0 : index
    %c0_4 = arith.constant 0 : index
    %2 = vector.load %arg3[%c0_2, %c0_3, %c0_4] : memref<3x4x4xf32, #tpu.memory_space<vmem>>, vector<1x4x4xf32>
    %3 = vector.shape_cast %2 : vector<1x4x4xf32> to vector<4x4xf32>
    %c0_5 = arith.constant 0 : index
    %c0_6 = arith.constant 0 : index
    %c0_7 = arith.constant 0 : index
    %4 = vector.load %arg4[%c0_5, %c0_6, %c0_7] : memref<3x4x1xf32, #tpu.memory_space<vmem>>, vector<1x4x1xf32>
    %5 = vector.shape_cast %4 : vector<1x4x1xf32> to vector<4x1xf32>
    %cst = arith.constant dense<0.000000e+00> : vector<4x256xf32>
    %6 = tpu.matmul %3, %1, %cst {dimension_numbers = #tpu.dot_dimension_numbers<[1], [0], [0], [1], [0, 0, 1, 1], [], []>} : vector<4x4xf32>, vector<4x256xf32>, vector<4x256xf32> -> vector<4x256xf32>
    %7 = vector.broadcast %5 : vector<4x1xf32> to vector<4x256xf32>
    %8 = arith.addf %6, %7 : vector<4x256xf32>
    %c0_8 = arith.constant 0 : index
    %c0_9 = arith.constant 0 : index
    %c0_10 = arith.constant 0 : index
    %9 = vector.load %arg5[%c0_8, %c0_9, %c0_10] : memref<1x4x256xf32, #tpu.memory_space<vmem>>, vector<1x4x256xf32>
    %10 = vector.shape_cast %9 : vector<1x4x256xf32> to vector<4x256xf32>
    %11 = vector.shape_cast %8 : vector<4x256xf32> to vector<1x4x256xf32>
    tpu.vector_store %arg5[%c0_8, %c0_9, %c0_10], %11 {strides = array<i32>} : memref<1x4x256xf32, #tpu.memory_space<vmem>>, vector<1x4x256xf32>,
    %c1 = arith.constant 1 : index
    %c0_11 = arith.constant 0 : index
    %c0_12 = arith.constant 0 : index
    %12 = vector.load %arg3[%c1, %c0_11, %c0_12] : memref<3x4x4xf32, #tpu.memory_space<vmem>>, vector<1x4x4xf32>
    %13 = vector.shape_cast %12 : vector<1x4x4xf32> to vector<4x4xf32>
    %c1_13 = arith.constant 1 : index
    %c0_14 = arith.constant 0 : index
    %c0_15 = arith.constant 0 : index
    %14 = vector.load %arg4[%c1_13, %c0_14, %c0_15] : memref<3x4x1xf32, #tpu.memory_space<vmem>>, vector<1x4x1xf32>
    %15 = vector.shape_cast %14 : vector<1x4x1xf32> to vector<4x1xf32>
    %cst_16 = arith.constant dense<0.000000e+00> : vector<4x256xf32>
    %16 = tpu.matmul %13, %1, %cst_16 {dimension_numbers = #tpu.dot_dimension_numbers<[1], [0], [0], [1], [0, 0, 1, 1], [], []>} : vector<4x4xf32>, vector<4x256xf32>, vector<4x256xf32> -> vector<4x256xf32>
    %17 = vector.broadcast %15 : vector<4x1xf32> to vector<4x256xf32>
    %18 = arith.addf %16, %17 : vector<4x256xf32>
    %c0_17 = arith.constant 0 : index
    %c0_18 = arith.constant 0 : index
    %c0_19 = arith.constant 0 : index
    %19 = vector.load %arg6[%c0_17, %c0_18, %c0_19] : memref<1x4x256xf32, #tpu.memory_space<vmem>>, vector<1x4x256xf32>
    %20 = vector.shape_cast %19 : vector<1x4x256xf32> to vector<4x256xf32>
    %21 = vector.shape_cast %18 : vector<4x256xf32> to vector<1x4x256xf32>
    tpu.vector_store %arg6[%c0_17, %c0_18, %c0_19], %21 {strides = array<i32>} : memref<1x4x256xf32, #tpu.memory_space<vmem>>, vector<1x4x256xf32>,
    %c2 = arith.constant 2 : index
    %c0_20 = arith.constant 0 : index
    %c0_21 = arith.constant 0 : index
    %22 = vector.load %arg3[%c2, %c0_20, %c0_21] : memref<3x4x4xf32, #tpu.memory_space<vmem>>, vector<1x4x4xf32>
    %23 = vector.shape_cast %22 : vector<1x4x4xf32> to vector<4x4xf32>
    %c2_22 = arith.constant 2 : index
    %c0_23 = arith.constant 0 : index
    %c0_24 = arith.constant 0 : index
    %24 = vector.load %arg4[%c2_22, %c0_23, %c0_24] : memref<3x4x1xf32, #tpu.memory_space<vmem>>, vector<1x4x1xf32>
    %25 = vector.shape_cast %24 : vector<1x4x1xf32> to vector<4x1xf32>
    %cst_25 = arith.constant dense<0.000000e+00> : vector<4x256xf32>
    %26 = tpu.matmul %23, %1, %cst_25 {dimension_numbers = #tpu.dot_dimension_numbers<[1], [0], [0], [1], [0, 0, 1, 1], [], []>} : vector<4x4xf32>, vector<4x256xf32>, vector<4x256xf32> -> vector<4x256xf32>
    %27 = vector.broadcast %25 : vector<4x1xf32> to vector<4x256xf32>
    %28 = arith.addf %26, %27 : vector<4x256xf32>
    %c0_26 = arith.constant 0 : index
    %c0_27 = arith.constant 0 : index
    %c0_28 = arith.constant 0 : index
    %29 = vector.load %arg7[%c0_26, %c0_27, %c0_28] : memref<1x4x256xf32, #tpu.memory_space<vmem>>, vector<1x4x256xf32>
    %30 = vector.shape_cast %29 : vector<1x4x256xf32> to vector<4x256xf32>
    %31 = vector.shape_cast %28 : vector<4x256xf32> to vector<1x4x256xf32>
    tpu.vector_store %arg7[%c0_26, %c0_27, %c0_28], %31 {strides = array<i32>} : memref<1x4x256xf32, #tpu.memory_space<vmem>>, vector<1x4x256xf32>,
    return
  }
  func.func @transform_0(%arg0: i32, %arg1: i32) -> (i32, i32, i32) {
    %c0_i32 = arith.constant 0 : i32
    %c0_i32_0 = arith.constant 0 : i32
    return %arg0, %c0_i32, %arg1 : i32, i32, i32
  }
  func.func @transform_1(%arg0: i32, %arg1: i32) -> (i32, i32, i32) {
    %c0_i32 = arith.constant 0 : i32
    %c0_i32_0 = arith.constant 0 : i32
    %c0_i32_1 = arith.constant 0 : i32
    %c0_i32_2 = arith.constant 0 : i32
    return %c0_i32, %c0_i32_0, %c0_i32_1 : i32, i32, i32
  }
  func.func @transform_2(%arg0: i32, %arg1: i32) -> (i32, i32, i32) {
    %c0_i32 = arith.constant 0 : i32
    %c0_i32_0 = arith.constant 0 : i32
    %c0_i32_1 = arith.constant 0 : i32
    %c0_i32_2 = arith.constant 0 : i32
    return %c0_i32, %c0_i32_0, %c0_i32_1 : i32, i32, i32
  }
  func.func @transform_3(%arg0: i32, %arg1: i32) -> (i32, i32, i32) {
    %c0_i32 = arith.constant 0 : i32
    %c0_i32_0 = arith.constant 0 : i32
    return %arg0, %c0_i32, %arg1 : i32, i32, i32
  }
  func.func @transform_4(%arg0: i32, %arg1: i32) -> (i32, i32, i32) {
    %c0_i32 = arith.constant 0 : i32
    %c0_i32_0 = arith.constant 0 : i32
    return %arg0, %c0_i32, %arg1 : i32, i32, i32
  }
  func.func @transform_5(%arg0: i32, %arg1: i32) -> (i32, i32, i32) {
    %c0_i32 = arith.constant 0 : i32
    %c0_i32_0 = arith.constant 0 : i32
    return %arg0, %c0_i32, %arg1 : i32, i32, i32
  }
}

</mosaic_0001>

<bundles_post_ra>
// kernel: tpu_custom_call.1
= control target key start
LH: loop header
LB: loop body
LE: loop exit
PB: predicated region body
PF: predicated region fallthrough
CT: control target
= control target key end

     0   :  { %s1376_s0 = inlined_call_operand.hbm [shape: f32[2,4,256], index: 0, kind: input, shape index: {}]   ;;  %s1377_s1 = inlined_call_operand.vmem [shape: f32[3,4,4], index: 1, kind: input, shape index: {}]   ;;  %s1378_s2 = inlined_call_operand.vmem [shape: f32[3,4,1], index: 2, kind: input, shape index: {}]   ;;  %s1379_s3 = inlined_call_operand.hbm [shape: f32[2,4,256], index: 3, kind: output, shape index: {0}]   ;;  %s1380_s4 = inlined_call_operand.hbm [shape: f32[2,4,256], index: 4, kind: output, shape index: {1}]   ;;  %s1381_s5 = inlined_call_operand.hbm [shape: f32[2,4,256], index: 5, kind: output, shape index: {2}]  }
   0x1   :  { %1385 = sst [smem:[#allocation12_spill]] %s1376_s0 }
   0x2   :  { %1386 = sst [smem:[#allocation13_spill]] %s1377_s1 }
   0x3   :  { %1387 = sst [smem:[#allocation14_spill]] %s1378_s2 }
   0x4   :  { %11 = vsyncpa [#allocation3], 0 }
   0x5   :  { %13 = vsyncpa [#allocation3 + $0x1], 0 }
   0x6   :  { %14 = vsyncpa [#allocation4], 0 }
   0x7   :  { %16 = vsyncpa [#allocation4 + $0x1], 0 }
   0x8   :  { %17 = vsyncpa [#allocation7], 0 }
   0x9   :  { %19 = vsyncpa [#allocation7 + $0x1], 0  ;;  %s1093_s18 = smov 0   ;;  %s1095_s19 = smov 0  }
   0xa   :  { %s1097_s20 = smov 0   ;;  %s1099_s21 = smov 0  }
   0xb   :  { %s1101_s22 = smov 0   ;;  %s1103_s23 = smov 0  }
   0xc LB: > { %s1124_s24 = sadd.s32 4294967295, %s1055_s23   ;;  %s1383_s25 = sadd.s32 4294967294, %s1055_s23   ;;  %s1055_s23 = sphi %s1103_s23, %s25_s23   ;;  %s1051_s22 = sphi %s1101_s22, %s1408_s22   ;;  %s1047_s21 = sphi %s1099_s21, %s1407_s21   ;;  %s1043_s20 = sphi %s1097_s20, %s1406_s20   ;;  %s1039_s19 = sphi %s1095_s19, %s1405_s19   ;;  %s1035_s18 = sphi %s1093_s18, %s1404_s18  }
   0xd   : > { %s37_s26 = sadd.s32 1, %s1051_s22  ;;  %s46_s27 = sadd.s32 1, %s1043_s20 }
   0xe   : > { %p39_p0 = scmp.ge.s32.totalorder %s37_s26, 2  ;;  %p53_p1 = scmp.ne.s32.totalorder %s1043_s20, %s1039_s19 }
   0xf   : > { %p54_p2 = scmp.eq.s32.totalorder %s1055_s23, 0  ;;  %p59_p3 = scmp.ne.s32.totalorder %s1039_s19, %s1035_s18 }
  0x10   : > { %s1410_s26 = smov (%p39_p0, %s37_s26), 0  ;;  %p60_p5 = scmp.eq.s32.totalorder %s1124_s24, 0 }
  0x11   : > { %p1136_p4 = por %p54_p2, %p53_p1  ;;  %s41_s29 = ssub.s32 %s1051_s22, %s1410_s26 }
  0x12   : > { %p127_p6 = scmp.eq.s32.totalorder %s1124_s24, 1  ;;  %p44_p7 = scmp.eq.s32.totalorder %s41_s29, 0 }
  0x13   : > { %p1144_p8 = por %p60_p5, %p59_p3  ;;  %p133_p10 = scmp.eq.s32.totalorder %s1383_s25, 1 }
  0x14   : > { %p1148_p9 = por %p127_p6, %p53_p1  ;;  %p828_p13 = scmp.lt.s32.totalorder %s1055_s23, 2 }
  0x15   : > { %s1155_s7 = scalar_select %p44_p7, %s1043_s20, %s46_s27  }
  0x16   : > { %s1390_s6 = scalar_select %p1148_p9, 1, 0 }
  0x17   : > { %p1157_p11 = por %p133_p10, %p59_p3  ;;  %s215_s9 = sand.u32 1, %s1043_s20  }
  0x18   : > { %s770_s10 = sshll.u32 %s215_s9, 3  ;;  %s802_s11 = sshll.u32 %s1051_s22, 7 }
  0x19   : > { %s1391_s8 = scalar_select %p1157_p11, 1, 0 }
  0x1a   : > { %s1392_s0 = sld [smem:[#allocation12_spill]]  ;;  %s219_s15 = scalar_lea.vmem [#allocation2], %s770_s10 }
  0x1b   : > { %s229_s16 = sshll.u32 %s219_s15, 4  ;;  %p1174_p0 = pnand %p828_p13, %p1136_p4  ;;  %s1170_s16 = int_to_ptr.vmem [resolvable:$true] %s229_s16 }
  0x1c   : > { %s216_s27 = scalar_lea.sflag [#allocation3], %s215_s9 }
  0x1d   : > { %p885_p5 = pneg %p1174_p0 }
  0x20   : > { %s1168_s14 = scalar_lea.hbm %s1392_s0, %s802_s11  ;;  %s888_s28 = scalar_lea.hbm %s1392_s0, 256 }
  0x21   : > { %s883_s29 = scalar_lea.hbm %s1168_s14, 128  ;;  %p889_p4 = scmp.lt.u32.totalorder %s1168_s14, %s1392_s0 }
  0x22   : > { %p884_p3 = scmp.ne.s32.totalorder %s1168_s14, %s883_s29  ;;  %p890_p10 = scmp.lt.u32.totalorder %s888_s28, %s883_s29 }
  0x23   : > { %p892_p12 = scmp.lt.u32.totalorder %s883_s29, %s1168_s14 }
  0x24   : > { %p886_p6 = pnand %p885_p5, %p884_p3  ;;  %p891_p13 = por %p890_p10, %p889_p4 }
  0x26   : > { %p887_p7 = pneg %p886_p6  ;;  %p893_p1 = por %p892_p12, %p891_p13 }
  0x28   : > { %p894_p2 = pnand %p893_p1, %p887_p7 }
  0x2a   : > { %897 = shalt.err (!%p894_p2)
}
  0x2b   : > { %s898_s9 = scalar_lea.vmem %s1170_s16, 128  ;;  %s1057_s15 = smov [#allocation2]  }
  0x2c   : > { %p899_p3 = scmp.ne.s32.totalorder %s1170_s16, %s898_s9  ;;  %s903_s10 = sshll.u32 %s1057_s15, 4  ;;  %s904_s10 = int_to_ptr.vmem [resolvable:$false] %s903_s10 }
  0x2d   : > { %s905_s11 = scalar_lea.vmem %s904_s10, 256  ;;  %p906_p9 = scmp.lt.s32.totalorder %s1170_s16, %s904_s10 }
  0x2e   : > { %p901_p6 = pnand %p899_p3, %p885_p5  ;;  %p907_p4 = scmp.lt.s32.totalorder %s905_s11, %s898_s9 }
  0x30   : > { %p902_p11 = pneg %p901_p6  ;;  %p908_p10 = por %p907_p4, %p906_p9 }
  0x32   : > { %p909_p12 = pnand %p908_p10, %p902_p11 }
  0x34   : > { %912 = shalt.err (!%p909_p12)
}
  0x35   : > { %817 = dma.hbm_to_vmem [thread:$0]  (!%p1174_p0), %s1168_s14, 128, %s1170_s16, %s216_s27  }
  0x36   : > { %p1394_p1 = scmp.lt.s32.totalorder %s1055_s23, 3  ;;  %p1395_p2 = scmp.ge.s32.totalorder %s1055_s23, 1 }
  0x38   : > { %p235_p5 = pnand %p1395_p2, %p1394_p1 }
  0x39   : > { %s1210_s29 = sand.u32 (!%p235_p5), 1, %s1039_s19  }
  0x3a   : > { %238 = sbr.rel (%p235_p5) target bundleno = 352 (0x160), region = 32  ;;  %s1213_s28 = sshll.u32 (!%p235_p5), %s1210_s29, 3 }
  0x3b   : > { %s241_s12 = scalar_lea.sflag (!%p235_p5), [#allocation3], %s1210_s29  ;;  %s244_s17 = scalar_lea.vmem (!%p235_p5), [#allocation2], %s1213_s28 }
  0x41   : > { %1022 = dma.done.wait (%p1144_p8), %s241_s12, 128  }
  0x42   : > { %1024 = vsyncadd (%p1144_p8), %s241_s12, 4294967168  ;;  %v1058_v0 = vmov 0.0   ;;  %v1059_v1 = vmov 0   ;;  %v285_v2 = vld [vmem:[%s244_s17] sm:$0xff]  ;;  %vm299_vm0 = vcmask 1043456   ;;  %s1396_s2 = sld [smem:[#allocation14_spill]] }
  0x43   : > { %368 = vmatprep.mubr.f32.mxu0 %v1058_v0  ;;  %456 = vmatprep.mubr.f32.mxu1 %v1058_v0  ;;  %v294_v3 = vcombine.high %v285_v2, %v285_v2  ;;  %s1397_s1 = sld [smem:[#allocation13_spill]]  ;;  %vm295_vm1 = vcmask 31744   ;;  %s803_s27 = sshll.u32 %s1047_s21, 7 }
  0x44   : > { %880 = vset.pattern.permute.xlu0 %v1059_v1  ;;  %881 = vset.pattern.permute.xlu1 %v1059_v1  ;;  %s266_s13 = scalar_lea.vmem [#allocation5], %s1213_s28  ;;  %s273_s9 = scalar_lea.vmem [#allocation6], %s1213_s28 }
  0x45   : > { %778 = vmatprep.subr.msk.mxu0 %vm299_vm0, %v294_v3  ;;  %783 = vmatprep.subr.msk.mxu1 %vm299_vm0, %v294_v3  ;;  %s583_s30 = sshll.u32 %s266_s13, 4  ;;  %s599_s15 = sshll.u32 %s273_s9, 4  ;;  %s1260_s30 = int_to_ptr.vmem [resolvable:$true] %s583_s30  ;;  %s1269_s15 = int_to_ptr.vmem [resolvable:$true] %s599_s15 }
  0x46   : > { %779 = vmatpush1.msk.msra.mxu0 %vm299_vm0, %v285_v2  ;;  %784 = vmatpush1.msk.msra.mxu1 %vm299_vm0, %v285_v2  ;;  %s1384_s10 = scalar_lea.vmem [#allocation8], %s1213_s28  ;;  %s1258_s21 = scalar_lea.hbm %s1379_s3, %s803_s27 }
  0x47   : > { %788 = vmatprep.subr.msk.mxu0 %vm299_vm0, %v294_v3  ;;  %s615_s11 = sshll.u32 %s1384_s10, 4  ;;  %s1267_s10 = scalar_lea.hbm %s1380_s4, %s803_s27  ;;  %s1276_s11 = int_to_ptr.vmem [resolvable:$true] %s615_s11 }
  0x48   : > { %v782_v4 = vld [vmem:[%s1396_s2 + $0x4] sm:$0xf]  ;;  %v287_v7 = vld [vmem:[%s1396_s2] sm:$0xf]  ;;  %v787_v8 = vld [vmem:[%s1396_s2 + $0x8] sm:$0xf]  ;;  %s1274_s16 = scalar_lea.hbm %s1381_s5, %s803_s27 }
  0x49   : > { %v286_v5 = vld [vmem:[%s1397_s1] sm:$0xf]  ;;  %386 = vperm.xlu0 %880, %v782_v4   ;;  %v781_v6 = vld [vmem:[%s1397_s1 + $0x4] sm:$0xf]  ;;  %v786_v9 = vld [vmem:[%s1397_s1 + $0x8] sm:$0xf]  ;;  %474 = vperm.xlu1 %881, %v787_v8  }
  0x4a   : > { %780 = vmatmul.mubr.msk.f32.vlgmr.msra.gmra.mrb[0].mxu0 %vm295_vm1, %v286_v5  ;;  %785 = vmatmul.mubr.msk.f32.vlgmr.msra.gmra.mrb[0].mxu1 %vm295_vm1, %v781_v6  ;;  %s557_s0 = scalar_lea.sflag [#allocation4], %s1210_s29  ;;  %s913_s1 = scalar_lea.vmem %s1260_s30, 128 }
  0x4b   : > { %789 = vmatpush1.msk.msra.mxu0 %vm299_vm0, %v285_v2  ;;  %544 = vmatprep.mubr.f32.mxu0 %v1058_v0  ;;  %p914_p8 = scmp.ne.s32.totalorder %s1260_s30, %s913_s1  ;;  %p1398_p9 = scmp.ne.s32.totalorder %s1390_s6, 0 }
  0x4c   : > { %s1060_s25 = smov [#allocation5]  }
  0x4d   : > { %290 = vperm.xlu0 %880, %v287_v7   ;;  %p915_p11 = pnand %p914_p8, %p1398_p9  ;;  %s917_s14 = sshll.u32 %s1060_s25, 4  ;;  %s918_s14 = int_to_ptr.vmem [resolvable:$false] %s917_s14 }
  0x4e   : > { %790 = vmatmul.mubr.msk.f32.vlgmr.msra.gmra.mrb[2].mxu0 %vm295_vm1, %v786_v9  ;;  %s919_s2 = scalar_lea.vmem %s918_s14, 256  ;;  %p920_p7 = scmp.lt.s32.totalorder %s1260_s30, %s918_s14 }
  0x4f   : > { %p916_p0 = pneg %p915_p11  ;;  %p921_p13 = scmp.lt.s32.totalorder %s919_s2, %s913_s1 }
  0x51   : > { %p922_p3 = por %p921_p13, %p920_p7 }
  0x53   : > { %p923_p6 = pnand %p922_p3, %p916_p0 }
  0xc8   : > { %v387_v10 = vpop.permute.xlu0 %386  ;;  %v475_v19 = vpop.permute.xlu1 %474 }
  0xcc   : > { %v291_v11 = vpop.permute.xlu0 %290 }
 0x11d   : > { %v370_v12 = vpop.f32.mrb[0].mxu0  ;;  %v458_v15 = vpop.f32.mrb[0].mxu1 }
 0x11e   : > { %v371_v13 = vadd.f32 %v370_v12, %v291_v11  ;;  %v372_v14 = vpop.f32.mrb[1].mxu0  ;;  %v459_v17 = vadd.f32 %v458_v15, %v387_v10  ;;  %v460_v18 = vpop.f32.mrb[1].mxu1 }
 0x11f   : > { %v373_v16 = vadd.f32 %v372_v14, %v291_v11  ;;  %v461_v20 = vadd.f32 %v460_v18, %v387_v10 }
 0x121   : > { %v377_v21 = vcombine.low %v371_v13, %v373_v16  ;;  %v546_v22 = vpop.f32.mrb[2].mxu0  ;;  %v465_v23 = vcombine.low %v459_v17, %v461_v20 }
 0x122   : > { %v1262_v24 = vadd.f32 %v546_v22, %v475_v19  ;;  %v548_v25 = vpop.f32.mrb[3].mxu0 }
 0x123   : > { %v549_v26 = vadd.f32 %v548_v25, %v475_v19  ;;  %379 = vst [vmem:[%s266_s13] sm:$0xff] %v377_v21  ;;  %467 = vst [vmem:[%s273_s9] sm:$0xff] %v465_v23 }
 0x124   : > { %926 = shalt.err (!%p923_p6)
}
 0x125   : > { %s927_s29 = scalar_lea.hbm %s1258_s21, 128  ;;  %s931_s9 = scalar_lea.hbm %s1379_s3, 256 }
 0x126   : > { %p928_p4 = scmp.ne.s32.totalorder %s1258_s21, %s927_s29  ;;  %p932_p1 = scmp.lt.u32.totalorder %s1258_s21, %s1379_s3 }
 0x127   : > { %p933_p2 = scmp.lt.u32.totalorder %s931_s9, %s927_s29  ;;  %p935_p8 = scmp.lt.u32.totalorder %s927_s29, %s1258_s21 }
 0x128   : > { %p929_p10 = pnand %p928_p4, %p1398_p9 }
 0x129   : > { %p934_p5 = por %p933_p2, %p932_p1 }
 0x12a   : > { %p930_p12 = pneg %p929_p10 }
 0x12b   : > { %p936_p11 = por %p935_p8, %p934_p5 }
 0x12d   : > { %p937_p0 = pnand %p936_p11, %p930_p12 }
 0x12f   : > { %940 = shalt.err (!%p937_p0)
}
 0x130   : > { %808 = dma.vmem_to_hbm [thread:$0]  (%p1398_p9), %s1260_s30, 128, %s1258_s21, %s557_s0   ;;  %v553_v27 = vcombine.low %v1262_v24, %v549_v26 }
 0x131   : > { %s1399_s1 = sand.u32 1, %s1124_s24   ;;  %s941_s25 = scalar_lea.vmem %s1269_s15, 128 }
 0x132   : > { %s1303_s2 = scalar_lea.sflag [#allocation7], %s1399_s1  ;;  %p942_p7 = scmp.ne.s32.totalorder %s1269_s15, %s941_s25 }
 0x133   : > { %s1061_s14 = smov [#allocation6]  }
 0x134   : > { %p943_p13 = pnand %p942_p7, %p1398_p9  ;;  %s945_s29 = sshll.u32 %s1061_s14, 4  ;;  %s946_s29 = int_to_ptr.vmem [resolvable:$false] %s945_s29 }
 0x135   : > { %s947_s27 = scalar_lea.vmem %s946_s29, 256  ;;  %p948_p6 = scmp.lt.s32.totalorder %s1269_s15, %s946_s29 }
 0x136   : > { %p944_p3 = pneg %p943_p13  ;;  %p949_p4 = scmp.lt.s32.totalorder %s947_s27, %s941_s25 }
 0x138   : > { %p950_p10 = por %p949_p4, %p948_p6 }
 0x13a   : > { %p951_p12 = pnand %p950_p10, %p944_p3 }
 0x13c   : > { %954 = shalt.err (!%p951_p12)
}
 0x13d   : > { %s955_s0 = scalar_lea.hbm %s1267_s10, 128  ;;  %s959_s21 = scalar_lea.hbm %s1380_s4, 256 }
 0x13e   : > { %p956_p1 = scmp.ne.s32.totalorder %s1267_s10, %s955_s0  ;;  %p960_p8 = scmp.lt.u32.totalorder %s1267_s10, %s1380_s4 }
 0x13f   : > { %p961_p11 = scmp.lt.u32.totalorder %s959_s21, %s955_s0  ;;  %p963_p7 = scmp.lt.u32.totalorder %s955_s0, %s1267_s10 }
 0x140   : > { %p957_p2 = pnand %p956_p1, %p1398_p9 }
 0x141   : > { %p962_p0 = por %p961_p11, %p960_p8 }
 0x142   : > { %p958_p5 = pneg %p957_p2 }
 0x143   : > { %p964_p13 = por %p963_p7, %p962_p0 }
 0x145   : > { %p965_p3 = pnand %p964_p13, %p958_p5 }
 0x147   : > { %968 = shalt.err (!%p965_p3)
}
 0x148   : > { %809 = dma.vmem_to_hbm [thread:$0]  (%p1398_p9), %s1269_s15, 128, %s1267_s10, %s1303_s2  }
 0x149   : > { %s1400_s12 = scalar_lea.vmem [#allocation8], %s1213_s28  ;;  %s969_s17 = scalar_lea.vmem %s1276_s11, 128 }
 0x14a   : > { %555 = vst [vmem:[%s1400_s12] sm:$0xff] %v553_v27  ;;  %p970_p6 = scmp.ne.s32.totalorder %s1276_s11, %s969_s17  ;;  %s1062_s1 = smov [#allocation8]  }
 0x14b   : > { %s973_s25 = sshll.u32 %s1062_s1, 4  ;;  %s974_s25 = int_to_ptr.vmem [resolvable:$false] %s973_s25 }
 0x14c   : > { %p971_p4 = pnand %p970_p6, %p1398_p9  ;;  %s975_s14 = scalar_lea.vmem %s974_s25, 256 }
 0x14d   : > { %p976_p12 = scmp.lt.s32.totalorder %s1276_s11, %s974_s25  ;;  %p977_p1 = scmp.lt.s32.totalorder %s975_s14, %s969_s17 }
 0x14e   : > { %p972_p10 = pneg %p971_p4 }
 0x14f   : > { %p978_p2 = por %p977_p1, %p976_p12 }
 0x151   : > { %p979_p5 = pnand %p978_p2, %p972_p10 }
 0x153   : > { %982 = shalt.err (!%p979_p5)
}
 0x154   : > { %s983_s28 = scalar_lea.hbm %s1274_s16, 128  ;;  %s987_s29 = scalar_lea.hbm %s1381_s5, 256 }
 0x155   : > { %p984_p8 = scmp.ne.s32.totalorder %s1274_s16, %s983_s28  ;;  %p988_p7 = scmp.lt.u32.totalorder %s1274_s16, %s1381_s5 }
 0x156   : > { %p989_p13 = scmp.lt.u32.totalorder %s987_s29, %s983_s28  ;;  %p991_p6 = scmp.lt.u32.totalorder %s983_s28, %s1274_s16 }
 0x157   : > { %p985_p11 = pnand %p984_p8, %p1398_p9 }
 0x158   : > { %p990_p3 = por %p989_p13, %p988_p7 }
 0x159   : > { %p986_p0 = pneg %p985_p11 }
 0x15a   : > { %p992_p4 = por %p991_p6, %p990_p3 }
 0x15c   : > { %p993_p10 = pnand %p992_p4, %p986_p0 }
 0x15e   : > { %996 = shalt.err (!%p993_p10)
}
 0x15f   : > { %810 = dma.vmem_to_hbm [thread:$0]  (%p1398_p9), %s1276_s11, 128, %s1274_s16, %s1303_s2  }
 0x160 PF: > { %s627_s24 = sand.u32 1, %s1035_s18   ;;  %p1401_p12 = scmp.ne.s32.totalorder %s1391_s8, 0 }
 0x161   : > { %p1402_p1 = scmp.ge.s32.totalorder %s1055_s23, 2  ;;  %s628_s30 = scalar_lea.sflag [#allocation4], %s627_s24 }
 0x163   : > { %p819_p2 = pnand %p1402_p1, %p1401_p12 }
 0x165   : > { %1026 = dma.done.wait (!%p819_p2), %s628_s30, 128  }
 0x166   : > { %1028 = vsyncadd (!%p819_p2), %s628_s30, 4294967168  ;;  %s1403_s21 = sadd.s32 4294967294, %s1055_s23  }
 0x167   : > { %s636_s13 = sand.u32 1, %s1403_s21  }
 0x168   : > { %s637_s9 = scalar_lea.sflag [#allocation7], %s636_s13 }
 0x169   : > { %1030 = dma.done.wait (!%p819_p2), %s637_s9, 256  }
 0x16a   : > { %1032 = vsyncadd (!%p819_p2), %s637_s9, 4294967040  ;;  %s25_s23 = sadd.s32 1, %s1055_s23   ;;  %s1404_s18 = smov %s1039_s19 }
 0x16b   : > { %p22_p9 = scmp.ge.s32.totalorder %s25_s23, 4   ;;  %s1405_s19 = smov %s1043_s20 }
 0x16c   : > { %s1406_s20 = smov %s1155_s7  ;;  %s1407_s21 = smov %s1051_s22 }
 0x16d   : > { %s1408_s22 = smov %s1410_s26  ;;  %24 = sbr.rel (!%p22_p9) target bundleno = 12 (0xc), region = 113 }
 0x174   :  { %651 = vsyncpa [#allocation3], 1 }
 0x175   :  { %653 = vsyncpa [#allocation3 + $0x1], 1 }
 0x176   :  { %654 = vsyncpa [#allocation4], 1 }
 0x177   :  { %656 = vsyncpa [#allocation4 + $0x1], 1 }
 0x178   :  { %657 = vsyncpa [#allocation7], 1 }
 0x179   :  { %659 = vsyncpa [#allocation7 + $0x1], 1 }

</bundles_post_ra>
